<compile_context>
chip_gen: v7x
topology: tpu7x:2x2x1
jax: 0.10.0
libtpu: 0.0.40
codegen_flags: <defaults>
</compile_context>

<pallas_src>
import functools
import math

import jax
import jax.numpy as jnp
from jax.experimental import pallas as pl
from jax.experimental.pallas import tpu as pltpu


def _round_up(x, m):
    return ((x + m - 1) // m) * m


def _rbf_kernel(x_ref, w_ref, o_ref, *, norm):
    # x_ref: (TM, D+1)  rows of flattened states with a trailing ones column (f32)
    # w_ref: (D+1, F)   scaler-folded projection; folded bias is the last row
    # o_ref: (TM, F)    output tile
    z = jnp.dot(x_ref[...], w_ref[...], preferred_element_type=jnp.float32)  # MXU (K = D+1)
    o_ref[...] = (norm * jnp.cos(z)).astype(o_ref.dtype)                     # EUP cos + one vmul


_VMEM_BUDGET = 24 * 1024 * 1024  # conservative: fits v7x's 32 MiB scoped default


def _num_tensorcores():
    """TensorCores per chip: 2 on v7x, 1 on v5e/v6e (and as a safe fallback)."""
    try:
        kind = jax.devices()[0].device_kind.lower()
    except Exception:
        return 1
    return 2 if "v7" in kind else 1


def _vmem_bytes(tm, k_dim, size_out, out_itemsize=4, w_buffers=2, io_buffers=2):
    """Working-set estimate with lane/sublane padding (last dim -> x128, 2nd-last -> x8)."""
    x_tile = _round_up(tm, 8) * _round_up(k_dim, 128) * 4
    o_tile = _round_up(tm, 8) * _round_up(size_out, 128) * out_itemsize
    w_tile = _round_up(k_dim, 8) * _round_up(size_out, 128) * 4
    return io_buffers * (x_tile + o_tile) + w_buffers * w_tile


def _choose_row_tile(n, k_dim, size_out, tm_target, out_itemsize):
    """Pick an 8-aligned row tile; generation-aware grid splitting; respect VMEM."""
    n8 = _round_up(max(n, 1), 8)

    if _num_tensorcores() > 1:
        # v7x: two TensorCores share the "parallel" grid axis. Prefer ~512-row
        # tiles (~1% off roofline vs 1024) and >= 4 grid steps once there is
        # enough work, so each core gets prefetch/compute/writeback overlap.
        # TODO(synk): try pltpu.CORE_PARALLEL on this axis if plain "parallel"
        # doesn't shard across the two TCs on v7x.
        tm = min(_round_up(min(tm_target, 512), 8), n8)
        if n8 >= 4 * 8:
            tm = min(tm, max(8, (n8 // 4) // 8 * 8))
    else:
        # v5e/v6e: single TensorCore -- per-step pipeline overhead (~0.35 us) is
        # pure loss, so take the biggest 8-aligned tile (grid=1 for small N).
        tm = min(_round_up(tm_target, 8), n8)

    # Cap so the double-buffered working set stays under the VMEM budget.
    while tm > 8 and _vmem_bytes(tm, k_dim, size_out, out_itemsize) > _VMEM_BUDGET:
        tm = max(8, (tm // 2) // 8 * 8)
    return tm


def rbf_encoder_forward(states, mean, scale, w, b, *, components, tm=1024,
                        out_dtype=jnp.float32):
    """states: (..., size_in) -> (N, size_out), N = prod(leading dims).

    out_dtype defaults to float32 (module contract); bf16 is offered for
    bandwidth-bound v5e callers that accept it.
    """
    size_in = states.shape[-1]
    x = states.reshape(-1, size_in).astype(jnp.float32)
    n = x.shape[0]
    size_out = w.shape[1]
    assert size_out % 128 == 0, "feature dim must be a multiple of 128 (lane axis)"

    # Fold StandardScaler + bias into a single augmented matmul:
    #   ((x - mean)/scale) @ W + b == [x, 1] @ [[W / scale.T], [b - (mean/scale) @ W]]
    # sklearn substitutes 1.0 for zero-variance features -> guard scale == 0.
    safe_scale = jnp.where(scale == 0.0, 1.0, scale)                     # (1, D)
    w_eff = (w / safe_scale.T).astype(jnp.float32)                       # (D, F)
    b_eff = (b - (mean / safe_scale) @ w).astype(jnp.float32)            # (1, F)
    w_aug = jnp.concatenate([w_eff, b_eff], axis=0)                      # (D+1, F)

    k_dim = size_in + 1
    x_aug = jnp.concatenate([x, jnp.ones((n, 1), jnp.float32)], axis=1)  # (N, D+1)

    norm = math.sqrt(2.0 / components)
    out_itemsize = jnp.dtype(out_dtype).itemsize

    tm_eff = _choose_row_tile(n, k_dim, size_out, tm, out_itemsize)
    # Sub-32-bit outputs pack along sublanes; keep the row tile aligned to the
    # packed sublane tile (16 for bf16, 32 for 8-bit).
    sublane = {4: 8, 2: 16, 1: 32}[out_itemsize]
    tm_eff = _round_up(tm_eff, sublane)

    n_pad = _round_up(n, tm_eff)
    if n_pad != n:
        x_aug = jnp.pad(x_aug, ((0, n_pad - n), (0, 0)))                 # tail rows sliced off below
    grid = n_pad // tm_eff

    # Explicit VMEM limit from the (padding-aware) working set, clamped to a
    # range that is safe on all of v5e/v6e/v7x.
    vmem_est = _vmem_bytes(tm_eff, k_dim, size_out, out_itemsize)
    vmem_limit = int(min(48 * 1024 * 1024,
                         max(vmem_est + vmem_est // 2, 16 * 1024 * 1024)))

    # Advisory cost: transcendental-bound (N*F cos), not matmul-bound (K is tiny).
    cost = pl.CostEstimate(
        flops=2 * n_pad * k_dim * size_out,
        transcendentals=n_pad * size_out,
        bytes_accessed=4 * (n_pad * k_dim + k_dim * size_out)
                       + out_itemsize * n_pad * size_out,
    )

    kernel = functools.partial(_rbf_kernel, norm=norm)
    out = pl.pallas_call(
        kernel,
        out_shape=jax.ShapeDtypeStruct((n_pad, size_out), out_dtype),
        grid_spec=pltpu.PrefetchScalarGridSpec(
            num_scalar_prefetch=0,
            grid=(grid,),
            in_specs=[
                pl.BlockSpec((tm_eff, k_dim), lambda i: (i, 0)),         # [x, 1] rows
                # Constant index_map -> the pipeline never re-fetches W''; at
                # D=5, F=512 it is ~10 KiB, so extra single-buffer plumbing
                # (pipeline_mode) is not worth it at this size.
                pl.BlockSpec((k_dim, size_out), lambda i: (0, 0)),       # W'' (W' with bias row)
            ],
            out_specs=pl.BlockSpec((tm_eff, size_out), lambda i: (i, 0)),
        ),
        compiler_params=pltpu.CompilerParams(
            dimension_semantics=("parallel",),
            vmem_limit_bytes=vmem_limit),
        cost_estimate=cost,
    )(x_aug, w_aug)

    if n_pad != n:
        out = out[:n]
    return out


def rbf_encoder_apply(states, mean, scale, w, b, *, components, memory=None, tm=1024,
                      out_dtype=jnp.float32):
    """Mirrors RBFEncoder.forward's memory pass-through behaviour."""
    feats = rbf_encoder_forward(states, mean, scale, w, b,
                                components=components, tm=tm, out_dtype=out_dtype)
    if memory is None:
        return feats
    return feats, memory


def make_rbf_params(key, size_in, gammas, components):
    """Synthetic parameters mirroring RbfState.__init__ (scaler + per-gamma RBFSampler)."""
    k_mean, k_scale, k_w, k_b = jax.random.split(key, 4)
    mean = jax.random.normal(k_mean, (1, size_in), jnp.float32) * 0.5
    scale = jax.random.uniform(k_scale, (1, size_in), jnp.float32, 0.5, 2.0)

    ws, bs = [], []
    for i, g in enumerate(gammas):
        kw = jax.random.fold_in(k_w, i)
        kb = jax.random.fold_in(k_b, i)
        w_i = jax.random.normal(kw, (size_in, components), jnp.float32) * math.sqrt(2.0 * g)
        b_i = jax.random.uniform(kb, (1, components), jnp.float32, 0.0, 2.0 * math.pi)
        ws.append(w_i)
        bs.append(b_i)
    w = jnp.concatenate(ws, axis=1)   # (size_in, n_gammas * components)
    b = jnp.concatenate(bs, axis=1)   # (1,       n_gammas * components)
    return mean, scale, w, b


def rbf_encoder_reference(states, mean, scale, w, b, *, components):
    """Pure-JAX reference matching the PyTorch/sklearn semantics (incl. scale==0 guard)."""
    size_in = states.shape[-1]
    x = states.reshape(-1, size_in).astype(jnp.float32)
    safe_scale = jnp.where(scale == 0.0, 1.0, scale)
    xs = (x - mean) / safe_scale
    z = xs @ w + b
    return math.sqrt(2.0 / components) * jnp.cos(z)


if __name__ == "__main__":
    key = jax.random.PRNGKey(0)
    k_in1, k_in2, k_par = jax.random.split(key, 3)

    # Small, module-consistent shapes: obs dim 4, 4 gammas x 128 components -> size_out = 512.
    size_in = 4
    gammas = (5.0, 2.0, 1.0, 0.5)
    components = 128
    size_out = len(gammas) * components

    mean, scale, w, b = make_rbf_params(k_par, size_in, gammas, components)

    # Case 1: batch of 2 trajectories x 8 steps (N = 16), default float32 output.
    states1 = jax.random.normal(k_in1, (2, 8, size_in), jnp.float32)
    out1 = jax.block_until_ready(
        rbf_encoder_forward(states1, mean, scale, w, b, components=components))
    ref1 = rbf_encoder_reference(states1, mean, scale, w, b, components=components)
    assert out1.shape == (16, size_out) and out1.dtype == jnp.float32
    assert jnp.allclose(out1, ref1, atol=1e-5, rtol=1e-5)

    # Case 2: ragged row count (3 x 5 = 15) to exercise the tail-pad/slice path,
    # plus a zero-variance feature to exercise the sklearn scale==0 guard,
    # plus the memory pass-through.
    scale_z = scale.at[0, 0].set(0.0)
    states2 = jax.random.normal(k_in2, (3, 5, size_in), jnp.float32)
    out2, mem = rbf_encoder_apply(states2, mean, scale_z, w, b,
                                  components=components, memory=jnp.zeros((3, 1)))
    out2 = jax.block_until_ready(out2)
    ref2 = rbf_encoder_reference(states2, mean, scale_z, w, b, components=components)
    assert out2.shape == (15, size_out) and out2.dtype == jnp.float32
    assert mem.shape == (3, 1)
    assert jnp.allclose(out2, ref2, atol=1e-5, rtol=1e-5)
    assert bool(jnp.all(jnp.isfinite(out2)))

    # Case 3: optional bf16 output path (v5e bandwidth option), loose tolerance.
    out3 = jax.block_until_ready(
        rbf_encoder_forward(states1, mean, scale, w, b,
                            components=components, out_dtype=jnp.bfloat16))
    assert out3.shape == (16, size_out) and out3.dtype == jnp.bfloat16
    assert jnp.allclose(out3.astype(jnp.float32), ref1, atol=1e-2, rtol=1e-2)

    print("KERNEL_OK")
</pallas_src>

<mosaic_0001>
module attributes {stable_mosaic.version = 11 : i64} {
  func.func @_rbf_kernel(%arg0: i32, %arg1: memref<16x5xf32, #tpu.memory_space<vmem>>, %arg2: memref<5x512xf32, #tpu.memory_space<vmem>>, %arg3: memref<16x512xf32, #tpu.memory_space<vmem>>) attributes {dimension_semantics = [#tpu.dimension_semantics<parallel>], iteration_bounds = array<i64: 1>, scalar_prefetch = 0 : i64, scratch_operands = 0 : i64, tpu.core_type = #tpu.core_type<tc>, window_params = [{transform_indices = @transform_0, window_bounds = array<i64: 16, 5>}, {pipeline_mode = #tpu.pipeline_mode<synchronous>, transform_indices = @transform_1, window_bounds = array<i64: 5, 512>}, {transform_indices = @transform_2, window_bounds = array<i64: 16, 512>}]} {
    %c0 = arith.constant 0 : index
    %c0_0 = arith.constant 0 : index
    %0 = vector.load %arg1[%c0, %c0_0] : memref<16x5xf32, #tpu.memory_space<vmem>>, vector<16x5xf32>
    %c0_1 = arith.constant 0 : index
    %c0_2 = arith.constant 0 : index
    %1 = vector.load %arg2[%c0_1, %c0_2] : memref<5x512xf32, #tpu.memory_space<vmem>>, vector<5x512xf32>
    %cst = arith.constant dense<0.000000e+00> : vector<16x512xf32>
    %2 = tpu.matmul %0, %1, %cst {dimension_numbers = #tpu.dot_dimension_numbers<[1], [0], [0], [1], [0, 0, 1, 1], [], []>} : vector<16x5xf32>, vector<5x512xf32>, vector<16x512xf32> -> vector<16x512xf32>
    %3 = math.cos %2 : vector<16x512xf32>
    %cst_3 = arith.constant 1.250000e-01 : f32
    %4 = vector.broadcast %cst_3 : f32 to vector<16x512xf32>
    %5 = arith.mulf %4, %3 : vector<16x512xf32>
    %c0_4 = arith.constant 0 : index
    %c0_5 = arith.constant 0 : index
    %6 = vector.load %arg3[%c0_4, %c0_5] : memref<16x512xf32, #tpu.memory_space<vmem>>, vector<16x512xf32>
    tpu.vector_store %arg3[%c0_4, %c0_5], %5 {strides = array<i32>} : memref<16x512xf32, #tpu.memory_space<vmem>>, vector<16x512xf32>,
    return
  }
  func.func @transform_0(%arg0: i32) -> (i32, i32) {
    %c0_i32 = arith.constant 0 : i32
    %c0_i32_0 = arith.constant 0 : i32
    return %arg0, %c0_i32 : i32, i32
  }
  func.func @transform_1(%arg0: i32) -> (i32, i32) {
    %c0_i32 = arith.constant 0 : i32
    %c0_i32_0 = arith.constant 0 : i32
    %c0_i32_1 = arith.constant 0 : i32
    return %c0_i32, %c0_i32_0 : i32, i32
  }
  func.func @transform_2(%arg0: i32) -> (i32, i32) {
    %c0_i32 = arith.constant 0 : i32
    %c0_i32_0 = arith.constant 0 : i32
    return %arg0, %c0_i32 : i32, i32
  }
}

</mosaic_0001>

<bundles_post_ra>
// kernel: tpu_custom_call.1
= control target key start
LH: loop header
LB: loop body
LE: loop exit
PB: predicated region body
PF: predicated region fallthrough
CT: control target
= control target key end

     0   :  { %7 = vsyncpa [#allocation3], 0  ;;  %s1922_s0 = inlined_call_operand.vmem [shape: f32[16,5], index: 0, kind: input, shape index: {}]   ;;  %s1923_s1 = inlined_call_operand.hbm [shape: f32[5,512], index: 1, kind: input, shape index: {}]   ;;  %s1924_s2 = inlined_call_operand.hbm [shape: f32[16,512], index: 2, kind: output, shape index: {}]  }
   0x1   :  { %8 = vsyncpa [#allocation4], 0  ;;  %s1224_s9 = smov [#allocation2]   ;;  %s1176_s13 = scalar_lea.hbm %s1923_s1, 512 }
   0x2   :  { %s17_s10 = sshll.u32 %s1224_s9, 4  ;;  %p1177_p0 = scmp.ne.s32.totalorder %s1923_s1, %s1176_s13  ;;  %s18_s10 = int_to_ptr.vmem [resolvable:$true] %s17_s10 }
   0x3   :  { %p1180_p1 = scmp.lt.u32.totalorder %s1176_s13, %s1923_s1 }
   0x5   :  { %p1182_p2 = pnand %p1180_p1, %p1177_p0 }
   0x7   :  { %1185 = shalt.err (!%p1182_p2)
}
   0x8   :  { %s1186_s18 = scalar_lea.vmem %s18_s10, 512  ;;  %p1191_p4 = scmp.lt.s32.totalorder %s18_s10, %s18_s10 }
   0x9   :  { %p1187_p3 = scmp.ne.s32.totalorder %s18_s10, %s1186_s18  ;;  %p1192_p5 = scmp.lt.s32.totalorder %s1186_s18, %s1186_s18 }
   0xb   :  { %p1193_p6 = por %p1192_p5, %p1191_p4 }
   0xd   :  { %p1194_p7 = pnand %p1193_p6, %p1187_p3 }
   0xf   :  { %1197 = shalt.err (!%p1194_p7)
}
  0x10   :  { %20 = dma.hbm_to_vmem [thread:$0]  %s1923_s1, 512, %s18_s10, [#allocation3]  }
  0x11   :  { %1220 = dma.done.wait [#allocation3], 512  }
  0x12   :  { %1221 = vsyncadd [#allocation3], 4294966784  ;;  %v1225_v0 = vmov 0.0   ;;  %vm37_vm0 = vcmask 1044480   ;;  %vm30_vm1 = vcmask 39936   ;;  %v24_v5 = vld [vmem:[%s1922_s0] sm:$0xff] }
  0x13   :  { %114 = vmatprep.mubr.f32.mxu0 %v1225_v0  ;;  %191 = vmatprep.mubr.f32.mxu1 %v1225_v0  ;;  %v27_v1 = vld [vmem:[#allocation2 + $0x8] sm:$0x1f]  ;;  %v29_v2 = vld [vmem:[#allocation2 + $0x18] sm:$0x1f]  ;;  %v26_v3 = vld [vmem:[#allocation2] sm:$0x1f] }
  0x14   :  { %1061 = vmatprep.subr.msk.mxu0 %vm37_vm0, %v27_v1  ;;  %1065 = vmatprep.subr.msk.mxu1 %vm37_vm0, %v29_v2  ;;  %v28_v4 = vld [vmem:[#allocation2 + $0x10] sm:$0x1f]  ;;  %v25_v6 = vld [vmem:[%s1922_s0 + $0x8] sm:$0xff]  ;;  %v1226_v42 = vmov 683565275   ;;  %s1232_s0 = smov [#allocation5]  }
  0x15   :  { %1062 = vmatpush1.msk.msra.mxu0 %vm37_vm0, %v26_v3  ;;  %1066 = vmatpush1.msk.msra.mxu1 %vm37_vm0, %v28_v4  ;;  %v1227_v46 = vmov 2475754826   ;;  %v1228_v48 = vmov 2131351028   ;;  %v1229_v50 = vmov 2102212464  }
  0x16   :  { %1063 = vmatmul.mubr.msk.f32.vlgmr.msra.gmra.mrb[0].mxu0 %vm30_vm1, %v24_v5  ;;  %1067 = vmatmul.mubr.msk.f32.vlgmr.msra.gmra.mrb[0].mxu1 %vm30_vm1, %v24_v5  ;;  %v1230_v52 = vmov 920167782   ;;  %v1231_v59 = vmov 1326507024   ;;  %s1049_s24 = sshll.u32 %s1232_s0, 4  ;;  %s1050_s24 = int_to_ptr.vmem [resolvable:$true] %s1049_s24 }
  0x17   :  { %120 = vmatprep.mubr.f32.mxu0 %v1225_v0  ;;  %197 = vmatprep.mubr.f32.mxu1 %v1225_v0  ;;  %s1198_s25 = scalar_lea.vmem %s1050_s24, 1024  ;;  %p1203_p9 = scmp.lt.s32.totalorder %s1050_s24, %s1050_s24 }
  0x18   :  { %p1199_p8 = scmp.ne.s32.totalorder %s1050_s24, %s1198_s25  ;;  %p1204_p10 = scmp.lt.s32.totalorder %s1198_s25, %s1198_s25 }
  0x1a   :  { %1064 = vmatmul.mubr.msk.f32.gmra.mrb[2].mxu0 %vm30_vm1, %v25_v6  ;;  %1068 = vmatmul.mubr.msk.f32.gmra.mrb[2].mxu1 %vm30_vm1, %v25_v6  ;;  %p1205_p11 = por %p1204_p10, %p1203_p9 }
  0x1c   :  { %p1206_p12 = pnand %p1205_p11, %p1199_p8 }
  0xe9   :  { %v1272_v7 = vpop.f32.mrb[0].mxu0  ;;  %v1274_v8 = vpop.f32.mrb[0].mxu1 }
  0xea   :  { %v204_v9 = vand.u32 2147483647, %v1272_v7  ;;  %v207_v10 = vand.u32 2139095040, %v1272_v7  ;;  %v1278_v11 = vpop.f32.mrb[1].mxu0  ;;  %v1280_v12 = vpop.f32.mrb[1].mxu1  ;;  %v413_v14 = vand.u32 2139095040, %v1274_v8 }
  0xeb   :  { %v410_v13 = vand.u32 2147483647, %v1274_v8  ;;  %v310_v19 = vand.u32 2139095040, %v1278_v11  ;;  %v307_v30 = vand.u32 2147483647, %v1278_v11  ;;  %vm206_vm15 = vcmp.lt.s32.totalorder %v1272_v7, 0 }
  0xec   :  { %v208_v15 = vshrl.u32 %v207_v10, 23  ;;  %v211_v16 = vand.u32 8388607, %v204_v9  ;;  %v414_v17 = vshrl.u32 %v413_v14, 23 }
  0xed   :  { %v417_v18 = vand.u32 8388607, %v410_v13  ;;  %v1289_v21 = vpop.f32.mrb[2].mxu0  ;;  %v1291_v22 = vpop.f32.mrb[2].mxu1  ;;  %v311_v24 = vshrl.u32 %v310_v19, 23 }
  0xee   :  { %v1069_v20 = vadd.s32 4294967169, %v208_v15  ;;  %v1077_v23 = vadd.s32 4294967169, %v414_v17  ;;  %v1293_v25 = vpop.f32.mrb[3].mxu0  ;;  %v212_v26 = vor.u32 8388608, %v211_v16  ;;  %v1296_v32 = vpop.f32.mrb[3].mxu1 }
  0xef   :  { %v418_v28 = vor.u32 8388608, %v417_v18  ;;  %v1073_v31 = vadd.s32 4294967169, %v311_v24  ;;  %v1304_v39 = vand.u32 8388607, %v307_v30 }
  0xf0   :  { %v214_v27 = vadd.s32 1, %v1069_v20  ;;  %v420_v29 = vadd.s32 1, %v1077_v23  ;;  %v1298_v37 = vshll.u32 %v212_v26, 8 }
  0xf1   :  { %v1300_v38 = vshll.u32 %v418_v28, 8  ;;  %v1306_v40 = vadd.s32 1, %v1073_v31 }
  0xf2   :  { %vm215_vm2 = vcmp.gt.s32.totalorder %v214_v27, 0  ;;  %vm421_vm3 = vcmp.gt.s32.totalorder %v420_v29, 0 }
  0xf3   :  { %v216_v33 = vsel %vm215_vm2, %v214_v27, 0  ;;  %v422_v36 = vsel %vm421_vm3, %v420_v29, 0  ;;  %vm318_vm8 = vcmp.gt.s32.totalorder %v1306_v40, 0 }
  0xf4   :  { %v217_v34 = vshrl.u32 %v216_v33, 5  ;;  %v218_v35 = vand.u32 31, %v216_v33  ;;  %v1309_v44 = vshrl.u32 %v422_v36, 5  ;;  %v424_v45 = vand.u32 31, %v422_v36 }
  0xf6   :  { %v219_v41 = vsub.s32 32, %v218_v35  ;;  %v221_v43 = vshll.u32 %v1226_v42, %v218_v35  ;;  %v224_v47 = vshll.u32 %v1227_v46, %v218_v35  ;;  %v227_v49 = vshll.u32 %v1228_v48, %v218_v35 }
  0xf7   :  { %v230_v51 = vshll.u32 %v1229_v50, %v218_v35  ;;  %v233_v53 = vshll.u32 %v1230_v52, %v218_v35  ;;  %vm236_vm4 = vcmp.lt.s32.totalorder %v217_v34, 1  ;;  %vm237_vm5 = vcmp.lt.s32.totalorder %v217_v34, 2 }
  0xf8   :  { %v222_v54 = vshrl.u32 %v1227_v46, %v219_v41  ;;  %v225_v55 = vshrl.u32 %v1228_v48, %v219_v41  ;;  %v228_v56 = vshrl.u32 %v1229_v50, %v219_v41  ;;  %v220_v57 = vshrl.u32 %v1226_v42, %v219_v41 }
  0xf9   :  { %v231_v58 = vshrl.u32 %v1230_v52, %v219_v41  ;;  %v234_v60 = vshrl.u32 %v1231_v59, %v219_v41  ;;  %v425_v0 = vsub.s32 32, %v424_v45  ;;  %vm238_vm6 = vcmp.lt.s32.totalorder %v217_v34, 3 }
  0xfa   :  { %v223_v61 = vor.u32 %v222_v54, %v221_v43  ;;  %v226_v62 = vor.u32 %v225_v55, %v224_v47  ;;  %v229_v63 = vor.u32 %v228_v56, %v227_v49  ;;  %vm239_vm7 = vcmp.lt.s32.totalorder %v217_v34, 4 }
  0xfb   :  { %v232_v1 = vor.u32 %v231_v58, %v230_v51  ;;  %v235_v2 = vor.u32 %v234_v60, %v233_v53  ;;  %v427_v16 = vshll.u32 %v1226_v42, %v424_v45  ;;  %v428_v19 = vshrl.u32 %v1227_v46, %v425_v0 }
  0xfc   :  { %v240_v3 = vsel %vm236_vm4, %v220_v57, %v223_v61  ;;  %v241_v4 = vsel %vm239_vm7, %v229_v63, 2102212464  ;;  %v244_v5 = vsel %vm236_vm4, %v223_v61, %v226_v62  ;;  %v248_v6 = vsel %vm236_vm4, %v226_v62, %v229_v63 }
  0xfd   :  { %v242_v10 = vsel %vm238_vm6, %v226_v62, %v241_v4  ;;  %v245_v14 = vsel %vm239_vm7, %v232_v1, 920167782  ;;  %v249_v15 = vsel %vm239_vm7, %v235_v2, 1326507024  ;;  %v430_v20 = vshll.u32 %v1227_v46, %v424_v45 }
  0xfe   :  { %v246_v17 = vsel %vm238_vm6, %v229_v63, %v245_v14  ;;  %v250_v18 = vsel %vm238_vm6, %v232_v1, %v249_v15  ;;  %v243_v23 = vsel %vm237_vm5, %v240_v3, %v242_v10  ;;  %v431_v27 = vshrl.u32 %v1228_v48, %v425_v0 }
  0xff   :  { %v247_v24 = vsel %vm237_vm5, %v244_v5, %v246_v17  ;;  %v251_v26 = vsel %vm237_vm5, %v248_v6, %v250_v18  ;;  %v429_v35 = vor.u32 %v428_v19, %v427_v16  ;;  %v433_v41 = vshll.u32 %v1228_v48, %v424_v45 }
 0x100   :  { %v1333_v28 = vmul.u32.u64.low %v1298_v37, %v251_v26  ;;  %v1334_v29 = vmul.u32.u64.high %v1298_v37, %v251_v26, %v1333_v28  ;;  %v1337_v31 = vmul.u32.u64.low %v1298_v37, %v247_v24  ;;  %v1338_v33 = vmul.u32.u64.high %v1298_v37, %v247_v24, %v1337_v31 }
 0x101   :  { %v432_v36 = vor.u32 %v431_v27, %v430_v20  ;;  %v434_v43 = vshrl.u32 %v1229_v50, %v425_v0  ;;  %v426_v34 = vshrl.u32 %v1226_v42, %v425_v0  ;;  %v436_v47 = vshll.u32 %v1229_v50, %v424_v45 }
 0x102   :  { %v437_v49 = vshrl.u32 %v1230_v52, %v425_v0  ;;  %v440_v51 = vshrl.u32 %v1231_v59, %v425_v0  ;;  %v259_v53 = vmul.u32 %v1298_v37, %v243_v23  ;;  %v439_v55 = vshll.u32 %v1230_v52, %v424_v45 }
 0x103   :  { %v435_v54 = vor.u32 %v434_v43, %v433_v41  ;;  %vm442_vm9 = vcmp.lt.s32.totalorder %v1309_v44, 1  ;;  %vm261_vm10 = vc.u32 %v1334_v29, %v1337_v31  ;;  %v262_v56 = vadd.s32 1, %v1338_v33 }
 0x104   :  { %v438_v57 = vor.u32 %v437_v49, %v436_v47  ;;  %vm443_vm11 = vcmp.lt.s32.totalorder %v1309_v44, 2  ;;  %v441_v58 = vor.u32 %v440_v51, %v439_v55  ;;  %vm444_vm12 = vcmp.lt.s32.totalorder %v1309_v44, 3 }
 0x105   :  { %vm445_vm13 = vcmp.lt.s32.totalorder %v1309_v44, 4  ;;  %v450_v60 = vsel %vm442_vm9, %v429_v35, %v432_v36  ;;  %v263_v37 = vsel %vm261_vm10, %v262_v56, %v1338_v33  ;;  %v454_v62 = vsel %vm442_vm9, %v432_v36, %v435_v54 }
 0x106   :  { %v447_v61 = vsel %vm445_vm13, %v435_v54, 2102212464  ;;  %v451_v45 = vsel %vm445_vm13, %v438_v57, 920167782  ;;  %v264_v63 = vadd.s32 %v263_v37, %v259_v53  ;;  %v446_v0 = vsel %vm442_vm9, %v426_v34, %v429_v35 }
 0x107   :  { %v452_v1 = vsel %vm444_vm12, %v435_v54, %v451_v45  ;;  %v455_v2 = vsel %vm445_vm13, %v441_v58, 1326507024  ;;  %v448_v3 = vsel %vm444_vm12, %v432_v36, %v447_v61  ;;  %v319_v6 = vsel %vm318_vm8, %v1306_v40, 0 }
 0x108   :  { %v453_v4 = vsel %vm443_vm11, %v450_v60, %v452_v1  ;;  %v456_v5 = vsel %vm444_vm12, %v438_v57, %v455_v2  ;;  %v265_v10 = vadd.s32 536870912, %v264_v63  ;;  %v449_v20 = vsel %vm443_vm11, %v446_v0, %v448_v3 }
 0x109   :  { %v457_v14 = vsel %vm443_vm11, %v454_v62, %v456_v5  ;;  %v1365_v15 = vmul.u32.u64.low %v1300_v38, %v453_v4  ;;  %v1366_v16 = vmul.u32.u64.high %v1300_v38, %v453_v4, %v1365_v15  ;;  %v321_v23 = vand.u32 31, %v319_v6 }
 0x10a   :  { %v1370_v17 = vmul.u32.u64.low %v1300_v38, %v457_v14  ;;  %v1371_v18 = vmul.u32.u64.high %v1300_v38, %v457_v14, %v1370_v17  ;;  %v1373_v19 = vshrl.u32 %v265_v10, 30  ;;  %v516_v40 = vand.u32 2139095040, %v1280_v12 }
 0x10b   :  { %v513_v24 = vand.u32 2147483647, %v1280_v12  ;;  %v468_v27 = vadd.s32 1, %v1366_v16  ;;  %v315_v28 = vor.u32 8388608, %v1304_v39  ;;  %v322_v33 = vsub.s32 32, %v321_v23 }
 0x10c   :  { %v267_v26 = vshll.u32 %v1373_v19, 30  ;;  %v465_v35 = vmul.u32 %v1300_v38, %v449_v20  ;;  %vm467_vm14 = vc.u32 %v1371_v18, %v1365_v15  ;;  %v517_v41 = vshrl.u32 %v516_v40, 23 }
 0x10d   :  { %v469_v44 = vsel %vm467_vm14, %v468_v27, %v1366_v16  ;;  %v325_v34 = vshrl.u32 %v1227_v46, %v322_v33  ;;  %v328_v47 = vshrl.u32 %v1228_v48, %v322_v33  ;;  %v1392_v49 = vand.u32 8388607, %v513_v24 }
 0x10e   :  { %v1385_v36 = vsub.s32 %v264_v63, %v267_v26  ;;  %v470_v43 = vadd.s32 %v469_v44, %v465_v35  ;;  %v324_v38 = vshll.u32 %v1226_v42, %v321_v23  ;;  %v331_v51 = vshrl.u32 %v1229_v50, %v322_v33 }
 0x10f   :  { %v1397_v53 = vshll.u32 %v315_v28, 8  ;;  %v260_v54 = vadd.s32 %v1337_v31, %v1334_v29  ;;  %v1402_v56 = vshrl.u32 %v319_v6, 5  ;;  %v327_v57 = vshll.u32 %v1227_v46, %v321_v23 }
 0x110   :  { %v270_v39 = vsub.s32 0, %v1385_v36  ;;  %v471_v55 = vadd.s32 536870912, %v470_v43  ;;  %v326_v60 = vor.u32 %v325_v34, %v324_v38  ;;  %v330_v37 = vshll.u32 %v1228_v48, %v321_v23 }
 0x111   :  { %v1081_v61 = vadd.s32 4294967169, %v517_v41  ;;  %v329_v62 = vor.u32 %v328_v47, %v327_v57  ;;  %v333_v63 = vshll.u32 %v1229_v50, %v321_v23  ;;  %v334_v0 = vshrl.u32 %v1230_v52, %v322_v33 }
 0x112   :  { %v1070_v58 = vmin.u32 %v270_v39, %v1385_v36  ;;  %v1407_v45 = vshrl.u32 %v471_v55, 30  ;;  %v332_v29 = vor.u32 %v331_v51, %v330_v37  ;;  %v336_v31 = vshll.u32 %v1230_v52, %v321_v23 }
 0x113   :  { %v337_v2 = vshrl.u32 %v1231_v59, %v322_v33  ;;  %v335_v4 = vor.u32 %v334_v0, %v333_v63  ;;  %vm339_vm0 = vcmp.lt.s32.totalorder %v1402_v56, 1  ;;  %vm340_vm1 = vcmp.lt.s32.totalorder %v1402_v56, 2 }
 0x114   :  { %v272_v1 = vclz %v1070_v58  ;;  %v473_v3 = vshll.u32 %v1407_v45, 30  ;;  %v290_v6 = vsub.s32 4, %v1373_v19  ;;  %vm342_vm2 = vcmp.lt.s32.totalorder %v1402_v56, 4 }
 0x115   :  { %v338_v10 = vor.u32 %v337_v2, %v336_v31  ;;  %vm341_vm3 = vcmp.lt.s32.totalorder %v1402_v56, 3  ;;  %v347_v16 = vsel %vm339_vm0, %v326_v60, %v329_v62  ;;  %v348_v17 = vsel %vm342_vm2, %v335_v4, 920167782 }
 0x116   :  { %v1071_v5 = vadd.s32 4294967294, %v272_v1  ;;  %v1418_v14 = vsub.s32 %v470_v43, %v473_v3  ;;  %vm1425_vm4 = vcmp.le.f32.partialorder %v204_v9, 0.7853982  ;;  %v344_v23 = vsel %vm342_vm2, %v332_v29, 2102212464 }
 0x117   :  { %v349_v40 = vsel %vm341_vm3, %v332_v29, %v348_v17  ;;  %v352_v26 = vsel %vm342_vm2, %v338_v10, 1326507024  ;;  %v323_v35 = vshrl.u32 %v1226_v42, %v322_v33  ;;  %v351_v44 = vsel %vm339_vm0, %v329_v62, %v332_v29 }
 0x118   :  { %vm1072_vm5 = vcmp.lt.s32.totalorder %v1071_v5, 0  ;;  %v476_v28 = vsub.s32 0, %v1418_v14  ;;  %v291_v9 = vsel %vm206_vm15, %v290_v6, %v1373_v19  ;;  %vm412_vm6 = vcmp.lt.s32.totalorder %v1274_v8, 0 }
 0x119   :  { %v275_v27 = vsel %vm1072_vm5, 0, %v1071_v5  ;;  %v353_v34 = vsel %vm341_vm3, %v335_v4, %v352_v26  ;;  %v343_v39 = vsel %vm339_vm0, %v323_v35, %v326_v60  ;;  %v345_v33 = vsel %vm341_vm3, %v329_v62, %v344_v23 }
 0x11a   :  { %v276_v41 = vsub.s32 32, %v275_v27  ;;  %v280_v43 = vsub.s32 4294967266, %v275_v27  ;;  %v1078_v47 = vmin.u32 %v476_v28, %v1418_v14  ;;  %v350_v38 = vsel %vm340_vm1, %v347_v16, %v349_v40 }
 0x11b   :  { %v277_v51 = vshll.u32 %v1385_v36, %v275_v27  ;;  %v354_v57 = vsel %vm340_vm1, %v351_v44, %v353_v34  ;;  %vm1453_vm7 = vcmp.le.f32.partialorder %v410_v13, 0.7853982  ;;  %v523_v63 = vadd.s32 1, %v1081_v61 }
 0x11c   :  { %v278_v55 = vshrl.u32 %v260_v54, %v276_v41  ;;  %v281_v19 = vadd.s32 127, %v280_v43  ;;  %v478_v60 = vclz %v1078_v47  ;;  %v496_v31 = vsub.s32 4, %v1407_v45 }
 0x11d   :  { %v1458_v37 = vmul.u32.u64.low %v1397_v53, %v354_v57  ;;  %v1459_v62 = vmul.u32.u64.high %v1397_v53, %v354_v57, %v1458_v37  ;;  %v1462_v36 = vmul.u32.u64.low %v1397_v53, %v350_v38  ;;  %v1463_v54 = vmul.u32.u64.high %v1397_v53, %v350_v38, %v1462_v36 }
 0x11e   :  { %v279_v0 = vor.u32 %v278_v55, %v277_v51  ;;  %v282_v1 = vshll.u32 %v281_v19, 23  ;;  %v1079_v29 = vadd.s32 4294967294, %v478_v60  ;;  %v521_v13 = vor.u32 8388608, %v1392_v49 }
 0x11f   :  { %vm524_vm8 = vcmp.gt.s32.totalorder %v523_v63, 0  ;;  %v466_v3 = vadd.s32 %v1365_v15, %v1371_v18  ;;  %v346_v61 = vsel %vm340_vm1, %v343_v39, %v345_v33  ;;  %v293_v6 = vsel %vm1425_vm4, 0, %v291_v9 }
 0x120   :  { %v283_v2 = vor.u32 4788187, %v282_v1  ;;  %v525_v4 = vsel %vm524_vm8, %v523_v63, 0  ;;  %v286_v5 = vcvt.s32.f32 %v279_v0  ;;  %vm1080_vm9 = vcmp.lt.s32.totalorder %v1079_v29, 0 }
 0x121   :  { %vm364_vm10 = vc.u32 %v1459_v62, %v1462_v36  ;;  %v481_v16 = vsel %vm1080_vm9, 0, %v1079_v29  ;;  %v365_v17 = vadd.s32 1, %v1463_v54  ;;  %v527_v23 = vand.u32 31, %v525_v4 }
 0x122   :  { %v284_v10 = vand.u32 2147483647, %v283_v2  ;;  %v482_v40 = vsub.s32 32, %v481_v16  ;;  %v486_v26 = vsub.s32 4294967266, %v481_v16  ;;  %v497_v15 = vsel %vm412_vm6, %v496_v31, %v1407_v45 }
 0x123   :  { %v362_v18 = vmul.u32 %v1397_v53, %v346_v61  ;;  %v1481_v27 = vand.u32 3, %v293_v6  ;;  %v366_v28 = vsel %vm364_vm10, %v365_v17, %v1463_v54  ;;  %v528_v35 = vsub.s32 32, %v527_v23 }
 0x124   :  { %v287_v56 = vmul.f32 %v286_v5, %v284_v10  ;;  %v483_v44 = vshll.u32 %v1418_v14, %v481_v16  ;;  %v484_v41 = vshrl.u32 %v466_v3, %v482_v40  ;;  %v487_v43 = vadd.s32 127, %v486_v26 }
 0x125   :  { %v367_v9 = vadd.s32 %v366_v28, %v362_v18  ;;  %v499_v47 = vsel %vm1453_vm7, 0, %v497_v15  ;;  %v1487_v39 = vshrl.u32 %v525_v4, 5  ;;  %v530_v45 = vshll.u32 %v1226_v42, %v527_v23 }
 0x126   :  { %v288_v34 = vxor.u32 2147483648, %v287_v56  ;;  %v485_v53 = vor.u32 %v484_v41, %v483_v44  ;;  %v488_v33 = vshll.u32 %v487_v43, 23  ;;  %v533_v51 = vshll.u32 %v1227_v46, %v527_v23 }
 0x127   :  { %v368_v38 = vadd.s32 536870912, %v367_v9  ;;  %v531_v14 = vshrl.u32 %v1227_v46, %v528_v35  ;;  %v534_v19 = vshrl.u32 %v1228_v48, %v528_v35  ;;  %v537_v57 = vshrl.u32 %v1229_v50, %v528_v35 }
 0x128   :  { %v289_v55 = vsel %vm206_vm15, %v288_v34, %v287_v56  ;;  %v489_v37 = vor.u32 4788187, %v488_v33  ;;  %v536_v0 = vshll.u32 %v1228_v48, %v527_v23  ;;  %v492_v1 = vcvt.s32.f32 %v485_v53 }
 0x129   :  { %v292_v60 = vsel %vm1425_vm4, %v1272_v7, %v289_v55  ;;  %v1499_v63 = vshrl.u32 %v368_v38, 30  ;;  %v539_v54 = vshll.u32 %v1229_v50, %v527_v23  ;;  %v540_v29 = vshrl.u32 %v1230_v52, %v528_v35 }
 0x12a   :  { %1144 = vcosq.f32 %v292_v60  ;;  %v490_v31 = vand.u32 2147483647, %v489_v37  ;;  %v538_v3 = vor.u32 %v537_v57, %v536_v0  ;;  %v532_v61 = vor.u32 %v531_v14, %v530_v45 }
 0x12b   :  { %1146 = vsinq.f32 %v292_v60  ;;  %v370_v2 = vshll.u32 %v1499_v63, 30  ;;  %v535_v4 = vor.u32 %v534_v19, %v533_v51  ;;  %v541_v20 = vor.u32 %v540_v29, %v539_v54 }
 0x12c   :  { %v543_v5 = vshrl.u32 %v1231_v59, %v528_v35  ;;  %v493_v6 = vmul.f32 %v492_v1, %v490_v31  ;;  %v542_v16 = vshll.u32 %v1230_v52, %v527_v23  ;;  %vm302_vm11 = vcmp.eq.s32.totalorder %v1481_v27, 2 }
 0x12d   :  { %v1506_v10 = vsub.s32 %v367_v9, %v370_v2  ;;  %v1510_v17 = vand.u32 3, %v499_v47  ;;  %v529_v40 = vshrl.u32 %v1226_v42, %v528_v35  ;;  %vm545_vm12 = vcmp.lt.s32.totalorder %v1487_v39, 1 }
 0x12e   :  { %vm548_vm13 = vcmp.lt.s32.totalorder %v1487_v39, 4  ;;  %vm299_vm14 = vcmp.eq.s32.totalorder %v1481_v27, 0  ;;  %v494_v26 = vxor.u32 2147483648, %v493_v6  ;;  %v544_v18 = vor.u32 %v543_v5, %v542_v16 }
 0x12f   :  { %v373_v15 = vsub.s32 0, %v1506_v10  ;;  %v550_v56 = vsel %vm548_vm13, %v538_v3, 2102212464  ;;  %vm298_vm15 = vcmp.lt.s32.totalorder %v1481_v27, 2  ;;  %vm546_vm0 = vcmp.lt.s32.totalorder %v1487_v39, 2 }
 0x130   :  { %v553_v23 = vsel %vm545_vm12, %v532_v61, %v535_v4  ;;  %v554_v28 = vsel %vm548_vm13, %v541_v20, 920167782  ;;  %v561_v35 = vshll.u32 %v521_v13, 8  ;;  %vm296_vm1 = vweird.f32 %v1272_v7 }
 0x131   :  { %v495_v44 = vsel %vm412_vm6, %v494_v26, %v493_v6  ;;  %v1074_v41 = vmin.u32 %v373_v15, %v1506_v10  ;;  %vm547_vm2 = vcmp.lt.s32.totalorder %v1487_v39, 3  ;;  %v549_v43 = vsel %vm545_vm12, %v529_v40, %v532_v61 }
 0x132   :  { %v498_v9 = vsel %vm1453_vm7, %v1274_v8, %v495_v44  ;;  %v551_v34 = vsel %vm547_vm2, %v535_v4, %v550_v56  ;;  %v555_v47 = vsel %vm547_vm2, %v538_v3, %v554_v28  ;;  %v557_v49 = vsel %vm545_vm12, %v535_v4, %v538_v3 }
 0x133   :  { %1148 = vcosq.f32 %v498_v9  ;;  %v375_v13 = vclz %v1074_v41  ;;  %v556_v45 = vsel %vm546_vm0, %v553_v23, %v555_v47  ;;  %v558_v53 = vsel %vm548_vm13, %v544_v18, 1326507024 }
 0x134   :  { %v1145_v33 = vpop.eup %1144  ;;  %1150 = vsinq.f32 %v498_v9  ;;  %v559_v38 = vsel %vm547_vm2, %v541_v20, %v558_v53  ;;  %v1543_v51 = vmul.u32.u64.low %v561_v35, %v556_v45  ;;  %v1544_v55 = vmul.u32.u64.high %v561_v35, %v556_v45, %v1543_v51 }
 0x135   :  { %v1147_v58 = vpop.eup %1146  ;;  %v303_v14 = vxor.u32 2147483648, %v1145_v33  ;;  %v1075_v19 = vadd.s32 4294967294, %v375_v13  ;;  %v560_v57 = vsel %vm546_vm0, %v557_v49, %v559_v38  ;;  %v616_v60 = vand.u32 2147483647, %v1289_v21 }
 0x136   :  { %v300_v37 = vxor.u32 2147483648, %v1147_v58  ;;  %v552_v0 = vsel %vm546_vm0, %v549_v43, %v551_v34  ;;  %v1552_v1 = vmul.u32.u64.low %v561_v35, %v560_v57  ;;  %v1553_v54 = vmul.u32.u64.high %v561_v35, %v560_v57, %v1552_v1 }
 0x137   :  { %v304_v29 = vsel %vm302_vm11, %v303_v14, %v1147_v58  ;;  %v363_v31 = vadd.s32 %v1462_v36, %v1459_v62  ;;  %vm1076_vm3 = vcmp.lt.s32.totalorder %v1075_v19, 0  ;;  %v619_v2 = vand.u32 2139095040, %v1289_v21 }
 0x138   :  { %v301_v3 = vsel %vm299_vm14, %v1145_v33, %v300_v37  ;;  %v378_v61 = vsel %vm1076_vm3, 0, %v1075_v19  ;;  %v393_v4 = vsub.s32 4, %v1499_v63  ;;  %v571_v39 = vadd.s32 1, %v1544_v55 }
 0x139   :  { %v305_v20 = vsel %vm298_vm15, %v301_v3, %v304_v29  ;;  %v379_v5 = vsub.s32 32, %v378_v61  ;;  %v383_v6 = vsub.s32 4294967266, %v378_v61  ;;  %v568_v16 = vmul.u32 %v561_v35, %v552_v0 }
 0x13a   :  { %v306_v62 = vsel %vm296_vm1, nan, %v305_v20  ;;  %v380_v36 = vshll.u32 %v1506_v10, %v378_v61  ;;  %vm570_vm4 = vc.u32 %v1553_v54, %v1543_v51  ;;  %v620_v40 = vshrl.u32 %v619_v2, 23 }
 0x13b   :  { %v1028_v26 = vmul.f32 0.125, %v306_v62  ;;  %v381_v15 = vshrl.u32 %v363_v31, %v379_v5  ;;  %v384_v18 = vadd.s32 127, %v383_v6  ;;  %v572_v56 = vsel %vm570_vm4, %v571_v39, %v1544_v55 }
 0x13c   :  { %vm502_vm5 = vweird.f32 %v1274_v8  ;;  %vm309_vm6 = vcmp.lt.s32.totalorder %v1278_v11, 0  ;;  %v573_v27 = vadd.s32 %v572_v56, %v568_v16  ;;  %v1085_v23 = vadd.s32 4294967169, %v620_v40 }
 0x13d   :  { %v1149_v28 = vpop.eup %1148  ;;  %1036 = vst [vmem:[#allocation5] sm:$0xff] %v1028_v26  ;;  %vm504_vm7 = vcmp.lt.s32.totalorder %v1510_v17, 2  ;;  %vm1577_vm8 = vcmp.le.f32.partialorder %v307_v30, 0.7853982  ;;  %v382_v10 = vor.u32 %v381_v15, %v380_v36  ;;  %v385_v35 = vshll.u32 %v384_v18, 23 }
 0x13e   :  { %v1151_v44 = vpop.eup %1150  ;;  %v509_v41 = vxor.u32 2147483648, %v1149_v28  ;;  %v574_v43 = vadd.s32 536870912, %v573_v27  ;;  %v623_v9 = vand.u32 8388607, %v616_v60  ;;  %v626_v34 = vadd.s32 1, %v1085_v23 }
 0x13f   :  { %v506_v47 = vxor.u32 2147483648, %v1151_v44  ;;  %vm508_vm9 = vcmp.eq.s32.totalorder %v1510_v17, 2  ;;  %v386_v49 = vor.u32 4788187, %v385_v35  ;;  %v394_v30 = vsel %vm309_vm6, %v393_v4, %v1499_v63 }
 0x140   :  { %vm505_vm10 = vcmp.eq.s32.totalorder %v1510_v17, 0  ;;  %v510_v13 = vsel %vm508_vm9, %v509_v41, %v1151_v44  ;;  %v1588_v45 = vshrl.u32 %v574_v43, 30  ;;  %vm627_vm11 = vcmp.gt.s32.totalorder %v626_v34, 0 }
 0x141   :  { %v507_v53 = vsel %vm505_vm10, %v1149_v28, %v506_v47  ;;  %v387_v33 = vand.u32 2147483647, %v386_v49  ;;  %v389_v38 = vcvt.s32.f32 %v382_v10  ;;  %v628_v55 = vsel %vm627_vm11, %v626_v34, 0 }
 0x142   :  { %v511_v58 = vsel %vm504_vm7, %v507_v53, %v510_v13  ;;  %v396_v14 = vsel %vm1577_vm8, 0, %v394_v30  ;;  %v576_v19 = vshll.u32 %v1588_v45, 30  ;;  %v624_v57 = vor.u32 8388608, %v623_v9 }
 0x143   :  { %v512_v63 = vsel %vm502_vm5, nan, %v511_v58  ;;  %v390_v37 = vmul.f32 %v389_v38, %v387_v33  ;;  %v630_v0 = vand.u32 31, %v628_v55  ;;  %v825_v31 = vand.u32 2139095040, %v1291_v22 }
 0x144   :  { %v1030_v1 = vmul.f32 0.125, %v512_v63  ;;  %v1597_v29 = vsub.s32 %v573_v27, %v576_v19  ;;  %v1600_v3 = vand.u32 3, %v396_v14  ;;  %v569_v17 = vadd.s32 %v1543_v51, %v1553_v54 }
 0x145   :  { %v391_v2 = vxor.u32 2147483648, %v390_v37  ;;  %v631_v61 = vsub.s32 32, %v630_v0  ;;  %v599_v8 = vsub.s32 4, %v1588_v45  ;;  %v629_v39 = vshrl.u32 %v628_v55, 5 }
 0x146   :  { %1038 = vst [vmem:[#allocation5 + $0x10] sm:$0xff] %v1030_v1  ;;  %v579_v4 = vsub.s32 0, %v1597_v29  ;;  %v1606_v20 = vshll.u32 %v624_v57, 8  ;;  %v633_v6 = vshll.u32 %v1226_v42, %v630_v0  ;;  %v636_v36 = vshll.u32 %v1227_v46, %v630_v0 }
 0x147   :  { %v392_v5 = vsel %vm309_vm6, %v391_v2, %v390_v37  ;;  %v634_v16 = vshrl.u32 %v1227_v46, %v631_v61  ;;  %v637_v62 = vshrl.u32 %v1228_v48, %v631_v61  ;;  %v826_v40 = vshrl.u32 %v825_v31, 23 }
 0x148   :  { %v395_v51 = vsel %vm1577_vm8, %v1278_v11, %v392_v5  ;;  %v1082_v54 = vmin.u32 %v579_v4, %v1597_v29  ;;  %v632_v26 = vshrl.u32 %v1226_v42, %v631_v61  ;;  %v639_v18 = vshll.u32 %v1228_v48, %v630_v0 }
 0x149   :  { %1152 = vcosq.f32 %v395_v51  ;;  %v635_v15 = vor.u32 %v634_v16, %v633_v6  ;;  %v638_v27 = vor.u32 %v637_v62, %v636_v36  ;;  %v640_v23 = vshrl.u32 %v1229_v50, %v631_v61 }
 0x14a   :  { %1154 = vsinq.f32 %v395_v51  ;;  %v581_v56 = vclz %v1082_v54  ;;  %v642_v28 = vshll.u32 %v1229_v50, %v630_v0  ;;  %v643_v7 = vshrl.u32 %v1230_v52, %v631_v61 }
 0x14b   :  { %v645_v10 = vshll.u32 %v1230_v52, %v630_v0  ;;  %v646_v35 = vshrl.u32 %v1231_v59, %v631_v61  ;;  %v641_v41 = vor.u32 %v640_v23, %v639_v18  ;;  %vm648_vm12 = vcmp.lt.s32.totalorder %v629_v39, 1 }
 0x14c   :  { %v1083_v44 = vadd.s32 4294967294, %v581_v56  ;;  %vm650_vm13 = vcmp.lt.s32.totalorder %v629_v39, 3  ;;  %vm515_vm14 = vcmp.lt.s32.totalorder %v1280_v12, 0  ;;  %v644_v43 = vor.u32 %v643_v7, %v642_v28 }
 0x14d   :  { %v647_v9 = vor.u32 %v646_v35, %v645_v10  ;;  %vm651_vm15 = vcmp.lt.s32.totalorder %v629_v39, 4  ;;  %v652_v34 = vsel %vm648_vm12, %v632_v26, %v635_v15  ;;  %v656_v49 = vsel %vm648_vm12, %v635_v15, %v638_v27 }
 0x14e   :  { %vm1084_vm0 = vcmp.lt.s32.totalorder %v1083_v44, 0  ;;  %v653_v47 = vsel %vm651_vm15, %v641_v41, 2102212464  ;;  %v660_v30 = vsel %vm648_vm12, %v638_v27, %v641_v41  ;;  %vm401_vm1 = vcmp.lt.s32.totalorder %v1600_v3, 2 }
 0x14f   :  { %v584_v13 = vsel %vm1084_vm0, 0, %v1083_v44  ;;  %v654_v53 = vsel %vm650_vm13, %v638_v27, %v653_v47  ;;  %v657_v33 = vsel %vm651_vm15, %v644_v43, 920167782  ;;  %v661_v38 = vsel %vm651_vm15, %v647_v9, 1326507024 }
 0x150   :  { %vm399_vm2 = vweird.f32 %v1278_v11  ;;  %v585_v55 = vsub.s32 32, %v584_v13  ;;  %v589_v58 = vsub.s32 4294967266, %v584_v13  ;;  %vm649_vm3 = vcmp.lt.s32.totalorder %v629_v39, 2 }
 0x151   :  { %v1093_v14 = vadd.s32 4294967169, %v826_v40  ;;  %v586_v19 = vshll.u32 %v1597_v29, %v584_v13  ;;  %v655_v57 = vsel %vm649_vm3, %v652_v34, %v654_v53  ;;  %v658_v63 = vsel %vm650_vm13, %v641_v41, %v657_v33 }
 0x152   :  { %v662_v37 = vsel %vm650_vm13, %v644_v43, %v661_v38  ;;  %v587_v0 = vshrl.u32 %v569_v17, %v585_v55  ;;  %v590_v1 = vadd.s32 127, %v589_v58  ;;  %v659_v31 = vsel %vm649_vm3, %v656_v49, %v658_v63 }
 0x153   :  { %v663_v2 = vsel %vm649_vm3, %v660_v30, %v662_v37  ;;  %v1153_v61 = vpop.eup %1152  ;;  %v1637_v6 = vmul.u32.u64.low %v1606_v20, %v659_v31  ;;  %v1638_v16 = vmul.u32.u64.high %v1606_v20, %v659_v31, %v1637_v6  ;;  %v832_v39 = vadd.s32 1, %v1093_v14 }
 0x154   :  { %v1633_v4 = vmul.u32.u64.low %v1606_v20, %v663_v2  ;;  %v1634_v5 = vmul.u32.u64.high %v1606_v20, %v663_v2, %v1633_v4  ;;  %v1155_v29 = vpop.eup %1154  ;;  %v406_v62 = vxor.u32 2147483648, %v1153_v61  ;;  %v588_v51 = vor.u32 %v587_v0, %v586_v19 }
 0x155   :  { %v591_v54 = vshll.u32 %v590_v1, 23  ;;  %vm402_vm4 = vcmp.eq.s32.totalorder %v1600_v3, 0  ;;  %v403_v17 = vxor.u32 2147483648, %v1155_v29  ;;  %vm405_vm5 = vcmp.eq.s32.totalorder %v1600_v3, 2 }
 0x156   :  { %v822_v36 = vand.u32 2147483647, %v1291_v22  ;;  %v407_v40 = vsel %vm405_vm5, %v406_v62, %v1155_v29  ;;  %v600_v15 = vsel %vm515_vm14, %v599_v8, %v1588_v45  ;;  %vm833_vm6 = vcmp.gt.s32.totalorder %v832_v39, 0 }
 0x157   :  { %v592_v26 = vor.u32 4788187, %v591_v54  ;;  %v404_v18 = vsel %vm402_vm4, %v1153_v61, %v403_v17  ;;  %v671_v56 = vmul.u32 %v1606_v20, %v655_v57  ;;  %vm673_vm7 = vc.u32 %v1634_v5, %v1637_v6 }
 0x158   :  { %v674_v27 = vadd.s32 1, %v1638_v16  ;;  %v408_v23 = vsel %vm401_vm1, %v404_v18, %v407_v40  ;;  %v595_v7 = vcvt.s32.f32 %v588_v51  ;;  %v834_v10 = vsel %vm833_vm6, %v832_v39, 0 }
 0x159   :  { %v593_v28 = vand.u32 2147483647, %v592_v26  ;;  %v409_v35 = vsel %vm399_vm2, nan, %v408_v23  ;;  %vm1659_vm8 = vcmp.le.f32.partialorder %v513_v24, 0.7853982  ;;  %v836_v20 = vand.u32 31, %v834_v10 }
 0x15a   :  { %v675_v8 = vsel %vm673_vm7, %v674_v27, %v1638_v16  ;;  %v1029_v44 = vmul.f32 0.125, %v409_v35  ;;  %v829_v3 = vand.u32 8388607, %v822_v36  ;;  %v602_v9 = vsel %vm1659_vm8, 0, %v600_v15 }
 0x15b   :  { %v596_v41 = vmul.f32 %v595_v7, %v593_v28  ;;  %v676_v43 = vadd.s32 %v675_v8, %v671_v56  ;;  %v1668_v11 = vshrl.u32 %v834_v10, 5  ;;  %v837_v34 = vsub.s32 32, %v836_v20 }
 0x15c   :  { %v839_v24 = vshll.u32 %v1226_v42, %v836_v20  ;;  %1037 = vst [vmem:[#allocation5 + $0x8] sm:$0xff] %v1029_v44  ;;  %v842_v30 = vshll.u32 %v1227_v46, %v836_v20  ;;  %v845_v13 = vshll.u32 %v1228_v48, %v836_v20  ;;  %v848_v55 = vshll.u32 %v1229_v50, %v836_v20 }
 0x15d   :  { %v597_v47 = vxor.u32 2147483648, %v596_v41  ;;  %v677_v49 = vadd.s32 536870912, %v676_v43  ;;  %v840_v53 = vshrl.u32 %v1227_v46, %v837_v34  ;;  %v843_v33 = vshrl.u32 %v1228_v48, %v837_v34 }
 0x15e   :  { %v846_v38 = vshrl.u32 %v1229_v50, %v837_v34  ;;  %v849_v19 = vshrl.u32 %v1230_v52, %v837_v34  ;;  %v852_v57 = vshrl.u32 %v1231_v59, %v837_v34  ;;  %v851_v1 = vshll.u32 %v1230_v52, %v836_v20 }
 0x15f   :  { %v598_v58 = vsel %vm515_vm14, %v597_v47, %v596_v41  ;;  %v678_v14 = vshrl.u32 %v677_v49, 30  ;;  %v841_v37 = vor.u32 %v840_v53, %v839_v24  ;;  %v844_v0 = vor.u32 %v843_v33, %v842_v30 }
 0x160   :  { %v601_v63 = vsel %vm1659_vm8, %v1280_v12, %v598_v58  ;;  %v847_v2 = vor.u32 %v846_v38, %v845_v13  ;;  %v850_v61 = vor.u32 %v849_v19, %v848_v55  ;;  %v830_v4 = vor.u32 8388608, %v829_v3 }
 0x161   :  { %1156 = vcosq.f32 %v601_v63  ;;  %v679_v31 = vshll.u32 %v678_v14, 30  ;;  %v853_v16 = vor.u32 %v852_v57, %v851_v1  ;;  %v606_v29 = vand.u32 3, %v602_v9 }
 0x162   :  { %1158 = vsinq.f32 %v601_v63  ;;  %vm618_vm9 = vcmp.lt.s32.totalorder %v1289_v21, 0  ;;  %v838_v51 = vshrl.u32 %v1226_v42, %v837_v34  ;;  %vm854_vm10 = vcmp.lt.s32.totalorder %v1668_v11, 1 }
 0x163   :  { %v1686_v62 = vsub.s32 %v676_v43, %v679_v31  ;;  %vm856_vm11 = vcmp.lt.s32.totalorder %v1668_v11, 3  ;;  %vm857_vm12 = vcmp.lt.s32.totalorder %v1668_v11, 4  ;;  %vm1694_vm13 = vcmp.le.f32.partialorder %v616_v60, 0.7853982 }
 0x164   :  { %v859_v17 = vsel %vm857_vm12, %v847_v2, 2102212464  ;;  %v862_v40 = vsel %vm854_vm10, %v841_v37, %v844_v0  ;;  %v863_v26 = vsel %vm857_vm12, %v850_v61, 920167782  ;;  %v866_v18 = vsel %vm854_vm10, %v844_v0, %v847_v2 }
 0x165   :  { %v682_v39 = vsub.s32 0, %v1686_v62  ;;  %v864_v15 = vsel %vm856_vm11, %v847_v2, %v863_v26  ;;  %v867_v56 = vsel %vm857_vm12, %v853_v16, 1326507024  ;;  %v870_v27 = vshll.u32 %v830_v4, 8 }
 0x166   :  { %v702_v28 = vsub.s32 4, %v678_v14  ;;  %vm855_vm14 = vcmp.lt.s32.totalorder %v1668_v11, 2  ;;  %v858_v60 = vsel %vm854_vm10, %v838_v51, %v841_v37  ;;  %vm605_vm15 = vweird.f32 %v1280_v12 }
 0x167   :  { %v1086_v23 = vmin.u32 %v682_v39, %v1686_v62  ;;  %v860_v7 = vsel %vm856_vm11, %v844_v0, %v859_v17  ;;  %v865_v10 = vsel %vm855_vm14, %v862_v40, %v864_v15  ;;  %v868_v35 = vsel %vm856_vm11, %v850_v61, %v867_v56 }
 0x168   :  { %v722_v45 = vand.u32 2139095040, %v1293_v25  ;;  %v869_v20 = vsel %vm855_vm14, %v866_v18, %v868_v35  ;;  %v1713_v44 = vmul.u32.u64.low %v870_v27, %v865_v10  ;;  %v1714_v41 = vmul.u32.u64.high %v870_v27, %v865_v10, %v1713_v44 }
 0x169   :  { %v684_v8 = vclz %v1086_v23  ;;  %vm607_vm0 = vcmp.lt.s32.totalorder %v606_v29, 2  ;;  %v1717_v43 = vmul.u32.u64.low %v870_v27, %v869_v20  ;;  %v1718_v3 = vmul.u32.u64.high %v870_v27, %v869_v20, %v1717_v43 }
 0x16a   :  { %v723_v9 = vshrl.u32 %v722_v45, 23  ;;  %vm608_vm1 = vcmp.eq.s32.totalorder %v606_v29, 0  ;;  %vm611_vm2 = vcmp.eq.s32.totalorder %v606_v29, 2  ;;  %v703_v47 = vsel %vm618_vm9, %v702_v28, %v678_v14 }
 0x16b   :  { %v1157_v34 = vpop.eup %1156  ;;  %v1087_v24 = vadd.s32 4294967294, %v684_v8  ;;  %v861_v13 = vsel %vm855_vm14, %v858_v60, %v860_v7  ;;  %v719_v53 = vand.u32 2147483647, %v1293_v25  ;;  %v672_v55 = vadd.s32 %v1637_v6, %v1634_v5 }
 0x16c   :  { %v1159_v49 = vpop.eup %1158  ;;  %v612_v30 = vxor.u32 2147483648, %v1157_v34  ;;  %v1089_v33 = vadd.s32 4294967169, %v723_v9  ;;  %v880_v58 = vadd.s32 1, %v1714_v41  ;;  %v705_v14 = vsel %vm1694_vm13, 0, %v703_v47 }
 0x16d   :  { %v609_v38 = vxor.u32 2147483648, %v1159_v49  ;;  %vm1088_vm3 = vcmp.lt.s32.totalorder %v1087_v24, 0  ;;  %vm879_vm4 = vc.u32 %v1718_v3, %v1713_v44  ;;  %v877_v0 = vmul.u32 %v870_v27, %v861_v13 }
 0x16e   :  { %v613_v19 = vsel %vm611_vm2, %v612_v30, %v1159_v49  ;;  %v687_v57 = vsel %vm1088_vm3, 0, %v1087_v24  ;;  %v881_v6 = vsel %vm879_vm4, %v880_v58, %v1714_v41  ;;  %v729_v31 = vadd.s32 1, %v1089_v33 }
 0x16f   :  { %v610_v11 = vsel %vm608_vm1, %v1157_v34, %v609_v38  ;;  %v688_v63 = vsub.s32 32, %v687_v57  ;;  %v692_v37 = vsub.s32 4294967266, %v687_v57  ;;  %v689_v5 = vshll.u32 %v1686_v62, %v687_v57 }
 0x170   :  { %v614_v1 = vsel %vm607_vm0, %v610_v11, %v613_v19  ;;  %v882_v16 = vadd.s32 %v881_v6, %v877_v0  ;;  %v726_v39 = vand.u32 8388607, %v719_v53  ;;  %vm730_vm5 = vcmp.gt.s32.totalorder %v729_v31, 0 }
 0x171   :  { %v615_v2 = vsel %vm605_vm15, nan, %v614_v1  ;;  %v690_v61 = vshrl.u32 %v672_v55, %v688_v63  ;;  %v693_v4 = vadd.s32 127, %v692_v37  ;;  %v928_v17 = vand.u32 2139095040, %v1296_v32 }
 0x172   :  { %v1031_v51 = vmul.f32 0.125, %v615_v2  ;;  %v883_v26 = vadd.s32 536870912, %v882_v16  ;;  %v731_v62 = vsel %vm730_vm5, %v729_v31, 0  ;;  %v1743_v12 = vand.u32 3, %v705_v14 }
 0x173   :  { %v691_v29 = vor.u32 %v690_v61, %v689_v5  ;;  %v694_v40 = vshll.u32 %v693_v4, 23  ;;  %v733_v15 = vand.u32 31, %v731_v62  ;;  %v727_v27 = vor.u32 8388608, %v726_v39 }
 0x174   :  { %1039 = vst [vmem:[#allocation5 + $0x18] sm:$0xff] %v1031_v51  ;;  %v1741_v56 = vshrl.u32 %v883_v26, 30  ;;  %v925_v28 = vand.u32 2147483647, %v1296_v32  ;;  %v929_v35 = vshrl.u32 %v928_v17, 23  ;;  %v732_v47 = vshrl.u32 %v731_v62, 5 }
 0x175   :  { %v695_v18 = vor.u32 4788187, %v694_v40  ;;  %v734_v23 = vsub.s32 32, %v733_v15  ;;  %v698_v7 = vcvt.s32.f32 %v691_v29  ;;  %v736_v45 = vshll.u32 %v1226_v42, %v733_v15 }
 0x176   :  { %v885_v10 = vshll.u32 %v1741_v56, 30  ;;  %v739_v34 = vshll.u32 %v1227_v46, %v733_v15  ;;  %v742_v49 = vshll.u32 %v1228_v48, %v733_v15  ;;  %v745_v30 = vshll.u32 %v1229_v50, %v733_v15 }
 0x177   :  { %v696_v60 = vand.u32 2147483647, %v695_v18  ;;  %v737_v8 = vshrl.u32 %v1227_v46, %v734_v23  ;;  %v740_v20 = vshrl.u32 %v1228_v48, %v734_v23  ;;  %v743_v41 = vshrl.u32 %v1229_v50, %v734_v23 }
 0x178   :  { %v1751_v9 = vsub.s32 %v882_v16, %v885_v10  ;;  %v746_v24 = vshrl.u32 %v1230_v52, %v734_v23  ;;  %v1757_v13 = vshll.u32 %v727_v27, 8  ;;  %v748_v14 = vshll.u32 %v1230_v52, %v733_v15 }
 0x179   :  { %v699_v43 = vmul.f32 %v698_v7, %v696_v60  ;;  %v738_v55 = vor.u32 %v737_v8, %v736_v45  ;;  %v741_v58 = vor.u32 %v740_v20, %v739_v34  ;;  %v744_v19 = vor.u32 %v743_v41, %v742_v49 }
 0x17a   :  { %v888_v38 = vsub.s32 0, %v1751_v9  ;;  %v747_v57 = vor.u32 %v746_v24, %v745_v30  ;;  %v749_v11 = vshrl.u32 %v1231_v59, %v734_v23  ;;  %v735_v0 = vshrl.u32 %v1226_v42, %v734_v23 }
 0x17b   :  { %v700_v33 = vxor.u32 2147483648, %v699_v43  ;;  %v1097_v1 = vadd.s32 4294967169, %v929_v35  ;;  %vm751_vm6 = vcmp.lt.s32.totalorder %v732_v47, 1  ;;  %vm752_vm7 = vcmp.lt.s32.totalorder %v732_v47, 2 }
 0x17c   :  { %v1094_v37 = vmin.u32 %v888_v38, %v1751_v9  ;;  %v750_v6 = vor.u32 %v749_v11, %v748_v14  ;;  %vm753_vm8 = vcmp.lt.s32.totalorder %v732_v47, 3  ;;  %vm754_vm10 = vcmp.lt.s32.totalorder %v732_v47, 4 }
 0x17d   :  { %v701_v63 = vsel %vm618_vm9, %v700_v33, %v699_v43  ;;  %v756_v2 = vsel %vm754_vm10, %v744_v19, 2102212464  ;;  %v759_v61 = vsel %vm751_vm6, %v738_v55, %v741_v58  ;;  %v760_v4 = vsel %vm754_vm10, %v747_v57, 920167782 }
 0x17e   :  { %v704_v5 = vsel %vm1694_vm13, %v1289_v21, %v701_v63  ;;  %v890_v31 = vclz %v1094_v37  ;;  %v755_v51 = vsel %vm751_vm6, %v735_v0, %v738_v55  ;;  %v761_v39 = vsel %vm753_vm8, %v744_v19, %v760_v4 }
 0x17f   :  { %1160 = vcosq.f32 %v704_v5  ;;  %v763_v17 = vsel %vm751_vm6, %v741_v58, %v744_v19  ;;  %v757_v29 = vsel %vm753_vm8, %v741_v58, %v756_v2  ;;  %v762_v40 = vsel %vm752_vm7, %v759_v61, %v761_v39 }
 0x180   :  { %1162 = vsinq.f32 %v704_v5  ;;  %v1095_v16 = vadd.s32 4294967294, %v890_v31  ;;  %v764_v54 = vsel %vm754_vm10, %v750_v6, 1326507024  ;;  %v935_v26 = vadd.s32 1, %v1097_v1 }
 0x181   :  { %v765_v62 = vsel %vm753_vm8, %v747_v57, %v764_v54  ;;  %v1771_v15 = vmul.u32.u64.low %v1757_v13, %v762_v40  ;;  %v1772_v18 = vmul.u32.u64.high %v1757_v13, %v762_v40, %v1771_v15  ;;  %v878_v27 = vadd.s32 %v1713_v44, %v1718_v3 }
 0x182   :  { %vm1096_vm9 = vcmp.lt.s32.totalorder %v1095_v16, 0  ;;  %v766_v60 = vsel %vm752_vm7, %v763_v17, %v765_v62  ;;  %vm936_vm11 = vcmp.gt.s32.totalorder %v935_v26, 0  ;;  %vm710_vm12 = vcmp.lt.s32.totalorder %v1743_v12, 2 }
 0x183   :  { %v893_v23 = vsel %vm1096_vm9, 0, %v1095_v16  ;;  %v758_v35 = vsel %vm752_vm7, %v755_v51, %v757_v29  ;;  %v937_v45 = vsel %vm936_vm11, %v935_v26, 0  ;;  %vm708_vm13 = vweird.f32 %v1289_v21 }
 0x184   :  { %v894_v7 = vsub.s32 32, %v893_v23  ;;  %v898_v10 = vsub.s32 4294967266, %v893_v23  ;;  %vm711_vm14 = vcmp.eq.s32.totalorder %v1743_v12, 0  ;;  %v939_v44 = vand.u32 31, %v937_v45 }
 0x185   :  { %v1783_v8 = vmul.u32.u64.low %v1757_v13, %v766_v60  ;;  %v1784_v20 = vmul.u32.u64.high %v1757_v13, %v766_v60, %v1783_v8  ;;  %v895_v3 = vshll.u32 %v1751_v9, %v893_v23  ;;  %v777_v34 = vadd.s32 1, %v1772_v18 }
 0x186   :  { %v896_v41 = vshrl.u32 %v878_v27, %v894_v7  ;;  %v899_v43 = vadd.s32 127, %v898_v10  ;;  %vm714_vm15 = vcmp.eq.s32.totalorder %v1743_v12, 2  ;;  %v774_v24 = vmul.u32 %v1757_v13, %v758_v35 }
 0x187   :  { %v932_v47 = vand.u32 8388607, %v925_v28  ;;  %v1792_v49 = vsub.s32 32, %v939_v44  ;;  %v1794_v55 = vshrl.u32 %v937_v45, 5  ;;  %v942_v9 = vshll.u32 %v1226_v42, %v939_v44 }
 0x188   :  { %v897_v33 = vor.u32 %v896_v41, %v895_v3  ;;  %v900_v38 = vshll.u32 %v899_v43, 23  ;;  %vm824_vm0 = vcmp.lt.s32.totalorder %v1291_v22, 0  ;;  %vm776_vm1 = vc.u32 %v1784_v20, %v1771_v15 }
 0x189   :  { %v1161_v30 = vpop.eup %1160  ;;  %v945_v13 = vshll.u32 %v1227_v46, %v939_v44  ;;  %v951_v57 = vshll.u32 %v1229_v50, %v939_v44  ;;  %v778_v37 = vsel %vm776_vm1, %v777_v34, %v1772_v18  ;;  %v943_v5 = vshrl.u32 %v1227_v46, %v1792_v49 }
 0x18a   :  { %v1163_v58 = vpop.eup %1162  ;;  %v715_v19 = vxor.u32 2147483648, %v1161_v30  ;;  %v901_v11 = vor.u32 4788187, %v900_v38  ;;  %v904_v63 = vcvt.s32.f32 %v897_v33  ;;  %v779_v1 = vadd.s32 %v778_v37, %v774_v24 }
 0x18b   :  { %v712_v14 = vxor.u32 2147483648, %v1163_v58  ;;  %v946_v6 = vshrl.u32 %v1228_v48, %v1792_v49  ;;  %v949_v61 = vshrl.u32 %v1229_v50, %v1792_v49  ;;  %v952_v4 = vshrl.u32 %v1230_v52, %v1792_v49 }
 0x18c   :  { %v716_v0 = vsel %vm714_vm15, %v715_v19, %v1163_v58  ;;  %v902_v2 = vand.u32 2147483647, %v901_v11  ;;  %v780_v51 = vadd.s32 536870912, %v779_v1  ;;  %v944_v39 = vor.u32 %v943_v5, %v942_v9 }
 0x18d   :  { %v713_v31 = vsel %vm711_vm14, %v1161_v30, %v712_v14  ;;  %v948_v46 = vshll.u32 %v1228_v48, %v939_v44  ;;  %v947_v40 = vor.u32 %v946_v6, %v945_v13  ;;  %v953_v54 = vor.u32 %v952_v4, %v951_v57 }
 0x18e   :  { %v717_v16 = vsel %vm710_vm12, %v713_v31, %v716_v0  ;;  %v905_v29 = vmul.f32 %v904_v63, %v902_v2  ;;  %v908_v62 = vsub.s32 4, %v1741_v56  ;;  %v1821_v50 = vshrl.u32 %v780_v51, 30 }
 0x18f   :  { %v718_v17 = vsel %vm708_vm13, nan, %v717_v16  ;;  %v955_v18 = vshrl.u32 %v1231_v59, %v1792_v49  ;;  %v933_v27 = vor.u32 8388608, %v932_v47  ;;  %v950_v23 = vor.u32 %v949_v61, %v948_v46 }
 0x190   :  { %v1032_v26 = vmul.f32 0.125, %v718_v17  ;;  %v906_v12 = vxor.u32 2147483648, %v905_v29  ;;  %v954_v60 = vshll.u32 %v1230_v52, %v939_v44  ;;  %vm1828_vm2 = vcmp.le.f32.partialorder %v822_v36, 0.7853982 }
 0x191   :  { %v782_v48 = vshll.u32 %v1821_v50, 30  ;;  %vm957_vm3 = vcmp.lt.s32.totalorder %v1794_v55, 1  ;;  %vm960_vm4 = vcmp.lt.s32.totalorder %v1794_v55, 4  ;;  %v909_v36 = vsel %vm824_vm0, %v908_v62, %v1741_v56 }
 0x192   :  { %1040 = vst [vmem:[#allocation5 + $0x20] sm:$0xff] %v1032_v26  ;;  %v907_v59 = vsel %vm824_vm0, %v906_v12, %v905_v29  ;;  %v956_v7 = vor.u32 %v955_v18, %v954_v60  ;;  %v965_v52 = vsel %vm957_vm3, %v944_v39, %v947_v40  ;;  %v966_v10 = vsel %vm960_vm4, %v953_v54, 920167782 }
 0x193   :  { %v910_v35 = vsel %vm1828_vm2, %v1291_v22, %v907_v59  ;;  %v783_v45 = vsub.s32 %v779_v1, %v782_v48  ;;  %vm959_vm5 = vcmp.lt.s32.totalorder %v1794_v55, 3  ;;  %vm958_vm6 = vcmp.lt.s32.totalorder %v1794_v55, 2 }
 0x194   :  { %1164 = vcosq.f32 %v910_v35  ;;  %v967_v8 = vsel %vm959_vm5, %v950_v23, %v966_v10  ;;  %v973_v44 = vshll.u32 %v933_v27, 8  ;;  %v962_v41 = vsel %vm960_vm4, %v950_v23, 2102212464 }
 0x195   :  { %1166 = vsinq.f32 %v910_v35  ;;  %v785_v3 = vsub.s32 0, %v783_v45  ;;  %v968_v56 = vsel %vm958_vm6, %v965_v52, %v967_v8  ;;  %v969_v43 = vsel %vm957_vm3, %v947_v40, %v950_v23 }
 0x196   :  { %v970_v34 = vsel %vm960_vm4, %v956_v7, 1326507024  ;;  %v1859_v24 = vmul.u32.u64.low %v973_v44, %v968_v56  ;;  %v1860_v47 = vmul.u32.u64.high %v973_v44, %v968_v56, %v1859_v24  ;;  %v911_v30 = vsel %vm1828_vm2, 0, %v909_v36 }
 0x197   :  { %v1090_v33 = vmin.u32 %v785_v3, %v783_v45  ;;  %v941_v38 = vshrl.u32 %v1226_v42, %v1792_v49  ;;  %v971_v9 = vsel %vm959_vm5, %v953_v54, %v970_v34  ;;  %v963_v13 = vsel %vm959_vm5, %v947_v40, %v962_v41 }
 0x198   :  { %v972_v57 = vsel %vm958_vm6, %v969_v43, %v971_v9  ;;  %v915_v14 = vand.u32 3, %v911_v30  ;;  %v983_v49 = vadd.s32 1, %v1860_v47  ;;  %v775_v1 = vadd.s32 %v1771_v15, %v1784_v20 }
 0x199   :  { %v787_v58 = vclz %v1090_v33  ;;  %v961_v19 = vsel %vm957_vm3, %v941_v38, %v944_v39  ;;  %v1875_v11 = vmul.u32.u64.low %v973_v44, %v972_v57  ;;  %v1876_v63 = vmul.u32.u64.high %v973_v44, %v972_v57, %v1875_v11 }
 0x19a   :  { %v964_v42 = vsel %vm958_vm6, %v961_v19, %v963_v13  ;;  %vm917_vm8 = vcmp.eq.s32.totalorder %v915_v14, 0  ;;  %vm920_vm9 = vcmp.eq.s32.totalorder %v915_v14, 2  ;;  %vm914_vm11 = vweird.f32 %v1291_v22 }
 0x19b   :  { %v1091_v37 = vadd.s32 4294967294, %v787_v58  ;;  %vm982_vm10 = vc.u32 %v1876_v63, %v1859_v24  ;;  %v980_v4 = vmul.u32 %v973_v44, %v964_v42  ;;  %vm916_vm12 = vcmp.lt.s32.totalorder %v915_v14, 2 }
 0x19c   :  { %v984_v51 = vsel %vm982_vm10, %v983_v49, %v1860_v47  ;;  %vm721_vm13 = vcmp.lt.s32.totalorder %v1293_v25, 0  ;;  %vm1891_vm14 = vcmp.le.f32.partialorder %v719_v53, 0.7853982  ;;  %v805_v36 = vsub.s32 4, %v1821_v50 }
 0x19d   :  { %vm1092_vm7 = vcmp.lt.s32.totalorder %v1091_v37, 0  ;;  %v985_v29 = vadd.s32 %v984_v51, %v980_v4  ;;  %v981_v56 = vadd.s32 %v1859_v24, %v1876_v63  ;;  %vm811_vm3 = vweird.f32 %v1293_v25 }
 0x19e   :  { %v1165_v0 = vpop.eup %1164  ;;  %v790_v5 = vsel %vm1092_vm7, 0, %v1091_v37  ;;  %v806_v44 = vsel %vm721_vm13, %v805_v36, %v1821_v50  ;;  %vm927_vm4 = vcmp.lt.s32.totalorder %v1296_v32, 0  ;;  %vm926_vm5 = vcmp.le.f32.partialorder %v925_v28, 0.7853982 }
 0x19f   :  { %v1167_v6 = vpop.eup %1166  ;;  %v921_v31 = vxor.u32 2147483648, %v1165_v0  ;;  %v791_v2 = vsub.s32 32, %v790_v5  ;;  %v795_v61 = vsub.s32 4294967266, %v790_v5  ;;  %v792_v55 = vshll.u32 %v783_v45, %v790_v5 }
 0x1a0   :  { %v918_v16 = vxor.u32 2147483648, %v1167_v6  ;;  %v986_v26 = vadd.s32 536870912, %v985_v29  ;;  %v808_v53 = vsel %vm1891_vm14, 0, %v806_v44  ;;  %vm1017_vm10 = vweird.f32 %v1296_v32 }
 0x1a1   :  { %v922_v39 = vsel %vm920_vm9, %v921_v31, %v1167_v6  ;;  %v793_v46 = vshrl.u32 %v775_v1, %v791_v2  ;;  %v796_v17 = vadd.s32 127, %v795_v61  ;;  %v812_v47 = vand.u32 3, %v808_v53 }
 0x1a2   :  { %v919_v15 = vsel %vm917_vm8, %v1165_v0, %v918_v16  ;;  %v987_v27 = vshrl.u32 %v986_v26, 30 }
 0x1a3   :  { %v923_v20 = vsel %vm916_vm12, %v919_v15, %v922_v39  ;;  %v794_v40 = vor.u32 %v793_v46, %v792_v55  ;;  %v797_v54 = vshll.u32 %v796_v17, 23  ;;  %vm817_vm0 = vcmp.eq.s32.totalorder %v812_v47, 2 }
 0x1a4   :  { %v924_v62 = vsel %vm914_vm11, nan, %v923_v20  ;;  %v988_v21 = vshll.u32 %v987_v27, 30  ;;  %vm814_vm1 = vcmp.eq.s32.totalorder %v812_v47, 0  ;;  %vm813_vm2 = vcmp.lt.s32.totalorder %v812_v47, 2 }
 0x1a5   :  { %v1034_v18 = vmul.f32 0.125, %v924_v62  ;;  %v798_v12 = vor.u32 4788187, %v797_v54  ;;  %v801_v60 = vcvt.s32.f32 %v794_v40  ;;  %v1011_v31 = vsub.s32 4, %v987_v27 }
 0x1a6   :  { %v989_v59 = vsub.s32 %v985_v29, %v988_v21 }
 0x1a7   :  { %1042 = vst [vmem:[#allocation5 + $0x30] sm:$0xff] %v1034_v18  ;;  %v799_v23 = vand.u32 2147483647, %v798_v12  ;;  %v1012_v61 = vsel %vm927_vm4, %v1011_v31, %v987_v27 }
 0x1a8   :  { %v991_v52 = vsub.s32 0, %v989_v59  ;;  %v1014_v4 = vsel %vm926_vm5, 0, %v1012_v61 }
 0x1a9   :  { %v802_v48 = vmul.f32 %v801_v60, %v799_v23 }
 0x1aa   :  { %v1098_v35 = vmin.u32 %v991_v52, %v989_v59 }
 0x1ab   :  { %v803_v7 = vxor.u32 2147483648, %v802_v48 }
 0x1ac   :  { %v993_v8 = vclz %v1098_v35 }
 0x1ad   :  { %v804_v10 = vsel %vm721_vm13, %v803_v7, %v802_v48 }
 0x1ae   :  { %v807_v45 = vsel %vm1891_vm14, %v1293_v25, %v804_v10  ;;  %v1099_v3 = vadd.s32 4294967294, %v993_v8  ;;  %v1018_v25 = vand.u32 3, %v1014_v4 }
 0x1af   :  { %1168 = vcosq.f32 %v807_v45 }
 0x1b0   :  { %1170 = vsinq.f32 %v807_v45  ;;  %vm1100_vm15 = vcmp.lt.s32.totalorder %v1099_v3, 0  ;;  %vm1023_vm6 = vcmp.eq.s32.totalorder %v1018_v25, 2  ;;  %vm1020_vm7 = vcmp.eq.s32.totalorder %v1018_v25, 0 }
 0x1b1   :  { %v996_v41 = vsel %vm1100_vm15, 0, %v1099_v3  ;;  %vm1019_vm8 = vcmp.lt.s32.totalorder %v1018_v25, 2 }
 0x1b2   :  { %v997_v43 = vsub.s32 32, %v996_v41  ;;  %v1001_v34 = vsub.s32 4294967266, %v996_v41  ;;  %v998_v30 = vshll.u32 %v989_v59, %v996_v41 }
 0x1b4   :  { %v999_v33 = vshrl.u32 %v981_v56, %v997_v43  ;;  %v1002_v38 = vadd.s32 127, %v1001_v34 }
 0x1b6   :  { %v1000_v58 = vor.u32 %v999_v33, %v998_v30  ;;  %v1003_v19 = vshll.u32 %v1002_v38, 23 }
 0x1b8   :  { %v1004_v14 = vor.u32 4788187, %v1003_v19  ;;  %v1007_v24 = vcvt.s32.f32 %v1000_v58 }
 0x1b9   :  { %v1169_v9 = vpop.eup %1168 }
 0x1ba   :  { %v1171_v13 = vpop.eup %1170  ;;  %v818_v50 = vxor.u32 2147483648, %v1169_v9  ;;  %v1005_v42 = vand.u32 2147483647, %v1004_v14 }
 0x1bb   :  { %v815_v57 = vxor.u32 2147483648, %v1171_v13 }
 0x1bc   :  { %v819_v11 = vsel %vm817_vm0, %v818_v50, %v1171_v13  ;;  %v1008_v0 = vmul.f32 %v1007_v24, %v1005_v42 }
 0x1bd   :  { %v816_v37 = vsel %vm814_vm1, %v1169_v9, %v815_v57 }
 0x1be   :  { %v820_v63 = vsel %vm813_vm2, %v816_v37, %v819_v11  ;;  %v1009_v5 = vxor.u32 2147483648, %v1008_v0 }
 0x1bf   :  { %v821_v49 = vsel %vm811_vm3, nan, %v820_v63 }
 0x1c0   :  { %v1033_v1 = vmul.f32 0.125, %v821_v49  ;;  %v1010_v6 = vsel %vm927_vm4, %v1009_v5, %v1008_v0 }
 0x1c1   :  { %v1013_v2 = vsel %vm926_vm5, %v1296_v32, %v1010_v6 }
 0x1c2   :  { %1041 = vst [vmem:[#allocation5 + $0x28] sm:$0xff] %v1033_v1  ;;  %1172 = vcosq.f32 %v1013_v2 }
 0x1c3   :  { %1174 = vsinq.f32 %v1013_v2 }
 0x1cc   :  { %v1173_v16 = vpop.eup %1172 }
 0x1cd   :  { %v1175_v55 = vpop.eup %1174  ;;  %v1024_v51 = vxor.u32 2147483648, %v1173_v16 }
 0x1ce   :  { %v1021_v39 = vxor.u32 2147483648, %v1175_v55 }
 0x1cf   :  { %v1025_v46 = vsel %vm1023_vm6, %v1024_v51, %v1175_v55 }
 0x1d0   :  { %v1022_v28 = vsel %vm1020_vm7, %v1173_v16, %v1021_v39 }
 0x1d1   :  { %v1026_v17 = vsel %vm1019_vm8, %v1022_v28, %v1025_v46 }
 0x1d2   :  { %v1027_v29 = vsel %vm1017_vm10, nan, %v1026_v17 }
 0x1d3   :  { %v1035_v15 = vmul.f32 0.125, %v1027_v29 }
 0x1d5   :  { %1043 = vst [vmem:[#allocation5 + $0x38] sm:$0xff] %v1035_v15 }
 0x1d6   :  { %1209 = shalt.err (!%p1206_p12)
}
 0x1d7   :  { %s1210_s28 = scalar_lea.hbm %s1924_s2, 1024 }
 0x1d8   :  { %p1211_p13 = scmp.ne.s32.totalorder %s1924_s2, %s1210_s28  ;;  %p1214_p0 = scmp.lt.u32.totalorder %s1210_s28, %s1924_s2 }
 0x1da   :  { %p1216_p1 = pnand %p1214_p0, %p1211_p13 }
 0x1dc   :  { %1219 = shalt.err (!%p1216_p1)
}
 0x1dd   :  { %s1233_s5 = smov 512   ;;  %s1234_s6 = smov 32  }
 0x1de   :  { %1055 = dma.vmem_to_hbm [thread:$0]  %s1050_s24, 1024, %s1924_s2, [#allocation4], %s1233_s5, %s1233_s5, %s1234_s6  }
 0x1df   :  { %1222 = dma.done.wait [#allocation4], 1024  }
 0x1e0   :  { %1223 = vsyncadd [#allocation4], 4294966272 }
 0x1e1   :  { %1059 = vsyncpa [#allocation3], 1 }
 0x1e2   :  { %1060 = vsyncpa [#allocation4], 1 }

</bundles_post_ra>
